<compile_context>
chip_gen: v6e
topology: v6e:2x2x1
jax: 0.10.0
libtpu: 0.0.40
codegen_flags: <defaults>
</compile_context>

<pallas_src>
import functools

import jax
import jax.numpy as jnp
from jax.experimental import pallas as pl
from jax.experimental.pallas import tpu as pltpu


# ----------------------------- Pallas kernel ------------------------------ #

def _linear_kernel(x_ref, wt_ref, b_ref, o_ref, *, out_features):
    # x_ref : (TB, E)      f32  VMEM   (batch tile of activations)
    # wt_ref: (E, O_pad)   bf16 VMEM   (transposed weight, grid-resident)
    # b_ref : (1, O)       f32  VMEM   (bias, grid-resident)
    # o_ref : (TB, O)      f32  VMEM   (unpadded output tile)
    x_bf = x_ref[...].astype(jnp.bfloat16)          # cast under the DMA (VPU)
    acc = jnp.dot(x_bf, wt_ref[...],
                  preferred_element_type=jnp.float32)   # MXU, f32 accumulate
    # Padded weight columns are zero; static slice before the store so the
    # HBM output carries only the useful O columns.
    o_ref[...] = acc[:, :out_features] + b_ref[...]


def _round_up(a, b):
    return (a + b - 1) // b * b


@functools.partial(jax.jit, static_argnames=("block_rows",))
def linear_pallas(x, w_bf, b, *, block_rows=2048):
    """y = x @ w_bf[:, :O] + b on the MXU.

    x    : (B, E) float32
    w_bf : (E, O_pad) bfloat16  (transposed nn.Linear weight, zero-padded to
                                 a multiple of 128 lanes)
    b    : (1, O) float32
    returns (B, O) float32
    """
    B, E = x.shape
    O_pad = w_bf.shape[1]
    O = b.shape[1]

    # Batch tiling: big tiles to amortize per-step overhead, but keep >= 2
    # grid steps when B is large enough so v7x's two TensorCores both work.
    if B <= 256:
        TB = _round_up(B, 8)                       # f32 sublane alignment
    else:
        TB = min(block_rows, _round_up(pl.cdiv(B, 2), 256))
    grid = (pl.cdiv(B, TB),)                       # ragged last tile handled

    kernel = functools.partial(_linear_kernel, out_features=O)

    out = pl.pallas_call(
        kernel,
        out_shape=jax.ShapeDtypeStruct((B, O), jnp.float32),
        grid=grid,
        in_specs=[
            # activations: one batch tile per grid step (double-buffered)
            pl.BlockSpec((TB, E), lambda i: (i, 0),
                         memory_space=pltpu.MemorySpace.VMEM),
            # weight / bias: same block every step -> stay VMEM-resident
            pl.BlockSpec((E, O_pad), lambda i: (0, 0),
                         memory_space=pltpu.MemorySpace.VMEM),
            pl.BlockSpec((1, O), lambda i: (0, 0),
                         memory_space=pltpu.MemorySpace.VMEM),
        ],
        out_specs=pl.BlockSpec((TB, O), lambda i: (i, 0),
                               memory_space=pltpu.MemorySpace.VMEM),
        compiler_params=pltpu.CompilerParams(
            dimension_semantics=("parallel",),     # shards across TCs on v7x
        ),
        cost_estimate=pl.CostEstimate(
            flops=2 * B * E * O_pad,
            bytes_accessed=(4 * B * E            # f32 activations (read)
                            + 2 * E * O_pad      # bf16 weights
                            + 4 * O              # f32 bias
                            + 4 * B * O          # f32 output (write)
                            ),
            transcendentals=0,
        ),
    )(x, w_bf, b)

    return out


# --------------------------- Module equivalent ----------------------------- #

def trunc_normal(key, shape, std):
    # torch.nn.init.trunc_normal_(std=2e-5) truncates at absolute +/-2, which
    # at std=2e-5 is ~1e5 sigma -- effectively an untruncated normal.
    return std * jax.random.normal(key, shape, jnp.float32)


class ClassificationHead:
    def __init__(self, embed_dim, nb_classes, K_range=(2, 3, 4, 5), *, key):
        self.embed_dim = embed_dim
        self.nb_classes = nb_classes
        self.out_features = len(K_range) * nb_classes

        # nn.Linear(embed_dim, out_features): weight (out, in), bias (out,)
        w = trunc_normal(key, (self.out_features, embed_dim), std=2e-05)

        # Hoisted, kernel-ready parameters (built once):
        #   * transposed weight, bf16, zero-padded to 128 lanes for the MXU
        #   * bias, f32, unpadded (matches the unpadded output)
        o_pad = max(_round_up(self.out_features, 128), 128)
        self.w_bf = (jnp.zeros((embed_dim, o_pad), jnp.bfloat16)
                     .at[:, :self.out_features]
                     .set(jnp.transpose(w).astype(jnp.bfloat16)))
        self.b = jnp.zeros((1, self.out_features), jnp.float32)

    def forward(self, x):
        # Matches the PyTorch module exactly: forward(x) returns 0.
        return 0

    def subclass_logits(self, x):
        # The module's only real compute path, run through the Pallas kernel.
        # Flatten all leading dims into one (rows, E) matmul so the MXU M
        # dimension is filled by a single call instead of many tiny ones.
        lead = x.shape[:-1]
        x2 = x.reshape(-1, self.embed_dim).astype(jnp.float32)
        y = linear_pallas(x2, self.w_bf, self.b)
        return y.reshape(*lead, self.out_features)


# ---------------------------------- main ----------------------------------- #

if __name__ == "__main__":
    key = jax.random.PRNGKey(0)
    k_param, k_x = jax.random.split(key)

    embed_dim = 32
    nb_classes = 5
    batch = 8

    head = ClassificationHead(embed_dim, nb_classes, key=k_param)

    x = jax.random.normal(k_x, (batch, embed_dim), jnp.float32)

    # forward() semantics: returns 0, exactly like the PyTorch module.
    out = head.forward(x)
    assert out == 0

    # Run the Pallas linear kernel (subclass_classifier) and check vs a
    # reference mirroring the kernel's bf16-operand / f32-accumulate math.
    logits = head.subclass_logits(x)
    jax.block_until_ready(logits)

    x_bf = x.astype(jnp.bfloat16).astype(jnp.float32)
    w_ref = head.w_bf[:, :head.out_features].astype(jnp.float32)
    ref = x_bf @ w_ref + head.b

    assert logits.shape == (batch, len((2, 3, 4, 5)) * nb_classes)
    assert logits.dtype == jnp.float32
    assert jnp.allclose(logits, ref, rtol=1e-2, atol=1e-6), (
        float(jnp.max(jnp.abs(logits - ref))))

    print("KERNEL_OK")
</pallas_src>

<mosaic_0001>
module attributes {stable_mosaic.version = 11 : i64} {
  func.func @_linear_kernel(%arg0: i32, %arg1: memref<8x32xf32, #tpu.memory_space<vmem>>, %arg2: memref<32x128xbf16, #tpu.memory_space<vmem>>, %arg3: memref<1x20xf32, #tpu.memory_space<vmem>>, %arg4: memref<8x20xf32, #tpu.memory_space<vmem>>) attributes {dimension_semantics = [#tpu.dimension_semantics<parallel>], iteration_bounds = array<i64: 1>, scalar_prefetch = 0 : i64, scratch_operands = 0 : i64, tpu.core_type = #tpu.core_type<tc>, window_params = [{transform_indices = @transform_0, window_bounds = array<i64: 8, 32>}, {pipeline_mode = #tpu.pipeline_mode<synchronous>, transform_indices = @transform_1, window_bounds = array<i64: 32, 128>}, {pipeline_mode = #tpu.pipeline_mode<synchronous>, transform_indices = @transform_2, window_bounds = array<i64: 1, 20>}, {transform_indices = @transform_3, window_bounds = array<i64: 8, 20>}]} {
    %c0 = arith.constant 0 : index
    %c0_0 = arith.constant 0 : index
    %0 = vector.load %arg1[%c0, %c0_0] : memref<8x32xf32, #tpu.memory_space<vmem>>, vector<8x32xf32>
    %1 = arith.truncf %0 : vector<8x32xf32> to vector<8x32xbf16>
    %c0_1 = arith.constant 0 : index
    %c0_2 = arith.constant 0 : index
    %2 = vector.load %arg2[%c0_1, %c0_2] : memref<32x128xbf16, #tpu.memory_space<vmem>>, vector<32x128xbf16>
    %cst = arith.constant dense<0.000000e+00> : vector<8x128xf32>
    %3 = tpu.matmul %1, %2, %cst {dimension_numbers = #tpu.dot_dimension_numbers<[1], [0], [0], [1], [0, 0, 1, 1], [], []>} : vector<8x32xbf16>, vector<32x128xbf16>, vector<8x128xf32> -> vector<8x128xf32>
    %4 = vector.extract_strided_slice %3 {offsets = [0, 0], sizes = [8, 20], strides = [1, 1]} : vector<8x128xf32> to vector<8x20xf32>
    %c0_3 = arith.constant 0 : index
    %c0_4 = arith.constant 0 : index
    %5 = vector.load %arg3[%c0_3, %c0_4] : memref<1x20xf32, #tpu.memory_space<vmem>>, vector<1x20xf32>
    %6 = vector.broadcast %5 : vector<1x20xf32> to vector<8x20xf32>
    %7 = arith.addf %4, %6 : vector<8x20xf32>
    %c0_5 = arith.constant 0 : index
    %c0_6 = arith.constant 0 : index
    %8 = vector.load %arg4[%c0_5, %c0_6] : memref<8x20xf32, #tpu.memory_space<vmem>>, vector<8x20xf32>
    tpu.vector_store %arg4[%c0_5, %c0_6], %7 {strides = array<i32>} : memref<8x20xf32, #tpu.memory_space<vmem>>, vector<8x20xf32>,
    return
  }
  func.func @transform_0(%arg0: i32) -> (i32, i32) {
    %c0_i32 = arith.constant 0 : i32
    %c0_i32_0 = arith.constant 0 : i32
    return %arg0, %c0_i32 : i32, i32
  }
  func.func @transform_1(%arg0: i32) -> (i32, i32) {
    %c0_i32 = arith.constant 0 : i32
    %c0_i32_0 = arith.constant 0 : i32
    %c0_i32_1 = arith.constant 0 : i32
    return %c0_i32, %c0_i32_0 : i32, i32
  }
  func.func @transform_2(%arg0: i32) -> (i32, i32) {
    %c0_i32 = arith.constant 0 : i32
    %c0_i32_0 = arith.constant 0 : i32
    %c0_i32_1 = arith.constant 0 : i32
    return %c0_i32, %c0_i32_0 : i32, i32
  }
  func.func @transform_3(%arg0: i32) -> (i32, i32) {
    %c0_i32 = arith.constant 0 : i32
    %c0_i32_0 = arith.constant 0 : i32
    return %arg0, %c0_i32 : i32, i32
  }
}

</mosaic_0001>

<bundles_post_ra>
// kernel: linear_pallas.1
= control target key start
LH: loop header
LB: loop body
LE: loop exit
PB: predicated region body
PF: predicated region fallthrough
CT: control target
= control target key end

     0   :  { %8 = vsyncpa [#allocation3], 0  ;;  %s259_s0 = inlined_call_operand.hbm [shape: f32[8,32], index: 0, kind: input, shape index: {}]   ;;  %s260_s1 = inlined_call_operand.hbm [shape: bf16[32,128], index: 1, kind: input, shape index: {}]   ;;  %s261_s2 = inlined_call_operand.vmem [shape: f32[1,20], index: 2, kind: input, shape index: {}]   ;;  %s262_s3 = inlined_call_operand.hbm [shape: f32[8,20], index: 3, kind: output, shape index: {}]  }
   0x1   :  { %9 = vsyncpa [#allocation6], 0 }
   0x2   :  { %10 = vsyncpa [#allocation4], 0  ;;  %s220_s12 = smov [#allocation2]   ;;  %s221_s14 = smov [#allocation5]  }
   0x3   :  { %s17_s13 = sshll.u32 %s220_s12, 4  ;;  %s26_s15 = sshll.u32 %s221_s14, 4  ;;  %s18_s13 = int_to_ptr.vmem [resolvable:$true] %s17_s13  ;;  %s27_s15 = int_to_ptr.vmem [resolvable:$true] %s26_s15 }
   0x4   :  { %s162_s16 = scalar_lea.vmem %s18_s13, 128  ;;  %p167_p1 = scmp.lt.s32.totalorder %s18_s13, %s18_s13 }
   0x5   :  { %p163_p0 = scmp.ne.s32.totalorder %s18_s13, %s162_s16  ;;  %p168_p2 = scmp.lt.s32.totalorder %s162_s16, %s162_s16 }
   0x7   :  { %p169_p3 = por %p168_p2, %p167_p1 }
   0x9   :  { %p170_p4 = pnand %p169_p3, %p163_p0 }
   0xb   :  { %173 = shalt.err (!%p170_p4)
}
   0xc   :  { %20 = dma.hbm_to_vmem [thread:$0]  %s259_s0, 128, %s18_s13, [#allocation3]  }
   0xd   :  { %s182_s19 = scalar_lea.vmem %s27_s15, 256  ;;  %p187_p6 = scmp.lt.s32.totalorder %s27_s15, %s27_s15 }
   0xe   :  { %p183_p5 = scmp.ne.s32.totalorder %s27_s15, %s182_s19  ;;  %p188_p7 = scmp.lt.s32.totalorder %s182_s19, %s182_s19 }
  0x10   :  { %p189_p8 = por %p188_p7, %p187_p6 }
  0x12   :  { %p190_p9 = pnand %p189_p8, %p183_p5 }
  0x14   :  { %193 = shalt.err (!%p190_p9)
}
  0x15   :  { %s222_s20 = smov 64   ;;  %s223_s21 = smov 4  }
  0x16   :  { %32 = dma.hbm_to_vmem [thread:$0]  %s260_s1, 256, %s27_s15, [#allocation6], %s222_s20, %s222_s20, %s223_s21  }
  0x17   :  { %214 = dma.done.wait [#allocation3], 128  }
  0x18   :  { %215 = vsyncadd [#allocation3], 4294967168 }
  0x19   :  { %216 = dma.done.wait [#allocation6], 256  }
  0x1a   :  { %217 = vsyncadd [#allocation6], 4294967040  ;;  %v224_v0 = vmov 0.0   ;;  %vm225_vm0 = vmmov 0   ;;  %v152_v1 = vld [vmem:[#allocation5 + $0x8] sm:$0xff]   ;;  %v153_v2 = vld [vmem:[#allocation5] sm:$0xff]  }
  0x1b   :  { %137 = vmatprep.subr.bf16.mxu0 %v224_v0  ;;  %141 = vmatprep.mubr.msk.bf16.mxu0 %vm225_vm0, %v224_v0  ;;  %v42_v3 = vld [vmem:[#allocation2] sm:$0xff]  ;;  %vm60_vm1 = vcmask 261120   ;;  %s226_s1 = smov [#allocation7]   ;;  %vm112_vm2 = vcmask 162816  }
  0x1c   :  { %138 = vmatpush3.bf16.msra.mxu0 %v152_v1  ;;  %v43_v4 = vpack.c.bf16 %v42_v3, %v42_v3  ;;  %v133_v5 = vld [vmem:[%s261_s2] ss:$0 sm:$0xff]  ;;  %s120_s25 = sshll.u32 %s226_s1, 4  ;;  %s121_s25 = int_to_ptr.vmem [resolvable:$true] %s120_s25 }
  0x1d   :  { %139 = vmatprep.subr.bf16.mxu0 %v224_v0  ;;  %s194_s26 = scalar_lea.vmem %s121_s25, 128  ;;  %p199_p11 = scmp.lt.s32.totalorder %s121_s25, %s121_s25 }
  0x1e   :  { %p195_p10 = scmp.ne.s32.totalorder %s121_s25, %s194_s26  ;;  %p200_p12 = scmp.lt.s32.totalorder %s194_s26, %s194_s26 }
  0x20   :  { %140 = vmatpush3.bf16.msra.mxu0 %v153_v2  ;;  %p201_p13 = por %p200_p12, %p199_p11 }
  0x22   :  { %p202_p0 = pnand %p201_p13, %p195_p10 }
  0x23   :  { %142 = vmatmul.mubr.msk.bf16.vlgmr.msra.gmra.mxu0 %vm60_vm1, %v43_v4 }
  0xe3   :  { %v98_v6 = vpop.f32.mrf.mxu0 }
  0xe4   :  { %v111_v7 = vadd.f32 %v133_v5, %v98_v6 }
  0xe5   :  { %v143_v8 = vpop.f32.mrf.mxu0 }
  0xe6   :  { %113 = vst.msk [vmem:[#allocation7] sm:$0xff] %vm112_vm2, %v111_v7 }
  0xe7   :  { %v101_v9 = vpop.f32.mrf.mxu0 }
  0xe8   :  { %205 = shalt.err (!%p202_p0)
}
  0xe9   :  { %123 = dma.vmem_to_hbm [thread:$0]  %s121_s25, 128, %s262_s3, [#allocation4]   ;;  %v144_v10 = vpop.f32.mrf.mxu0 }
  0xea   :  { %218 = dma.done.wait [#allocation4], 128  }
  0xeb   :  { %219 = vsyncadd [#allocation4], 4294967168 }
  0xec   :  { %127 = vsyncpa [#allocation3], 1 }
  0xed   :  { %128 = vsyncpa [#allocation6], 1 }
  0xee   :  { %129 = vsyncpa [#allocation4], 1 }

</bundles_post_ra>
